<compile_context>
chip_gen: v7x
topology: tpu7x:2x2x1
jax: 0.10.0
libtpu: 0.0.40
codegen_flags: <defaults>
</compile_context>

<pallas_src>
import functools
import math

import jax
import jax.numpy as jnp
from jax import lax
from jax.experimental import pallas as pl
from jax.experimental.pallas import tpu as pltpu

_EPS = 1e-12
_TARGET_BLOCK_BYTES = 4 << 20      # ~4 MiB per block, counted in f32 working precision
_MIN_SPLIT_ROWS = 512              # never shrink a block below this just to split the grid
_TARGET_GRID_STEPS = 8             # >= 4 pipelined steps per TensorCore on dual-TC chips
_MAX_PACKED_WIDTH = 512            # lcm gate for the packed (lane-dense) path
_VMEM_LIMIT = 40 << 20


def _round_up(n, m):
    return -(-n // m) * m


def _sublane_align(dtype):
    # Native tiles: (8,128) for 4-byte, (16,128) for 2-byte, (32,128) for 1-byte dtypes.
    return 8 * max(1, 4 // jnp.dtype(dtype).itemsize)


def _max_tile_rows(row_bytes_f32, align):
    mt = (_TARGET_BLOCK_BYTES // max(row_bytes_f32, 1)) // align * align
    return max(mt, align)


def _pick_tile(nrows, align, max_tile):
    """Rows per block: prefer >= _TARGET_GRID_STEPS grid steps (pipelining on both v7x
    TensorCores), keep blocks >= ~_MIN_SPLIT_ROWS rows (per-step-overhead plateau),
    respect the VMEM budget, and give small inputs a single full block."""
    tile = _round_up(max(1, -(-nrows // _TARGET_GRID_STEPS)), align)
    floor = min(_round_up(nrows, align), max(_MIN_SPLIT_ROWS, align))
    tile = max(tile, floor)
    tile = min(tile, max(max_tile, align))
    return max(tile, align)


# ---------------------------------------------------------------------------
# Packed lane-dense path: D < 128, W = lcm(D, 128) <= 512, rows % (W // D) == 0
# ---------------------------------------------------------------------------
def _l2norm_packed_kernel(x_ref, o_ref, *, seg_d, width):
    """x_ref/o_ref: (tile, width); each block row packs width//seg_d original rows of
    length seg_d contiguously along the lane axis."""
    x = x_ref[...].astype(jnp.float32)
    # Block-diagonal segment matrix built in-kernel (no HBM constant / extra DMA stream).
    # floor((i + 0.5) / seg_d) == i // seg_d exactly in f32 for i < 512, seg_d < 128.
    ri = lax.broadcasted_iota(jnp.int32, (width, width), 0).astype(jnp.float32)
    ci = lax.broadcasted_iota(jnp.int32, (width, width), 1).astype(jnp.float32)
    inv_d = jnp.float32(1.0 / seg_d)
    seg = (jnp.floor((ri + 0.5) * inv_d)
           == jnp.floor((ci + 0.5) * inv_d)).astype(jnp.float32)
    # Segmented sum of squares on the otherwise-idle MXU; the result is already broadcast
    # across each seg_d-wide segment, ready for the normalization multiply.
    # TODO(synk): on v5e a per-operand precision (HIGHEST, DEFAULT) would cut MXU passes
    # (seg is exactly representable in bf16); kept symmetric HIGHEST for safe lowering.
    ss = jnp.dot(x * x, seg, preferred_element_type=jnp.float32,
                 precision=lax.Precision.HIGHEST)
    inv = pl.reciprocal(jnp.sqrt(ss) + _EPS, approx=False)   # eps on the norm == torch
    o_ref[...] = (x * inv).astype(o_ref.dtype)


def _l2norm_packed(x2d, d, width):
    rows = x2d.shape[0]
    per_row = width // d                  # original rows packed per block row
    p = rows // per_row                   # packed rows (rows % per_row == 0 guaranteed)
    xp = x2d.reshape(p, width)            # contiguous row-major regrouping, no pad

    align = _sublane_align(x2d.dtype)
    max_tile = _max_tile_rows(width * 4, align)
    tile = _pick_tile(p, align, max_tile)

    kernel = functools.partial(_l2norm_packed_kernel, seg_d=d, width=width)
    out = pl.pallas_call(
        kernel,
        out_shape=jax.ShapeDtypeStruct((p, width), x2d.dtype),
        grid=(pl.cdiv(p, tile),),
        in_specs=[pl.BlockSpec((tile, width), lambda i: (i, 0))],
        out_specs=pl.BlockSpec((tile, width), lambda i: (i, 0)),
        compiler_params=pltpu.CompilerParams(
            dimension_semantics=("parallel",),
            vmem_limit_bytes=_VMEM_LIMIT,
        ),
    )(xp)
    return out.reshape(rows, d)


# ---------------------------------------------------------------------------
# General path: full reduction axis resident per block, rows tiled
# ---------------------------------------------------------------------------
def _l2norm_rows_kernel(x_ref, o_ref):
    x = x_ref[...].astype(jnp.float32)
    ss = jnp.sum(x * x, axis=-1, keepdims=True)
    inv = pl.reciprocal(jnp.sqrt(ss) + _EPS, approx=False)
    o_ref[...] = (x * inv).astype(o_ref.dtype)


def _l2norm_rows(x2d, d):
    rows = x2d.shape[0]
    align = _sublane_align(x2d.dtype)
    max_tile = _max_tile_rows(d * 4, align)
    tile = _pick_tile(rows, align, max_tile)
    # TODO(synk): assumes a (tile, d) f32 block fits VMEM; extremely large D would need a
    # two-pass D-tiled reduction with a per-row scratch accumulator.
    return pl.pallas_call(
        _l2norm_rows_kernel,
        out_shape=jax.ShapeDtypeStruct((rows, d), x2d.dtype),
        grid=(pl.cdiv(rows, tile),),
        in_specs=[pl.BlockSpec((tile, d), lambda i: (i, 0))],
        out_specs=pl.BlockSpec((tile, d), lambda i: (i, 0)),
        compiler_params=pltpu.CompilerParams(
            dimension_semantics=("parallel",),
            vmem_limit_bytes=_VMEM_LIMIT,
        ),
    )(x2d)


# ---------------------------------------------------------------------------
# Public entry point
# ---------------------------------------------------------------------------
@jax.jit
def l2_normalize_last_dim(x):
    """y = x / (||x||_2(last axis) + 1e-12), matching the PyTorch Norm module."""
    orig_shape = x.shape
    d = int(orig_shape[-1])
    rows = math.prod(int(s) for s in orig_shape[:-1]) if len(orig_shape) > 1 else 1
    if rows == 0 or d == 0:
        return x
    x2d = x.reshape(rows, d)

    use_packed = False
    width = d
    if d < 128:
        width = (d * 128) // math.gcd(d, 128)          # lcm(d, 128)
        per_row = width // d
        use_packed = (width <= _MAX_PACKED_WIDTH) and (rows % per_row == 0)

    if use_packed:
        out2d = _l2norm_packed(x2d, d, width)
    else:
        out2d = _l2norm_rows(x2d, d)
    return out2d.reshape(orig_shape)


if __name__ == "__main__":
    key = jax.random.PRNGKey(0)
    k1, k2 = jax.random.split(key)

    # Packed lane-dense path (D=16 -> W=128, 8 rows packed per lane row).
    x = jax.random.normal(k1, (2, 4, 16, 16), dtype=jnp.float32)
    y = jax.block_until_ready(l2_normalize_last_dim(x))
    y_ref = x / (jnp.linalg.norm(x, axis=-1, keepdims=True) + _EPS)
    assert y.shape == x.shape and y.dtype == x.dtype
    assert jnp.allclose(y, y_ref, atol=1e-5, rtol=1e-5), "packed path mismatch"

    # General path with a ragged row tail (partial last block, no wrapper pad/slice).
    x2 = jax.random.normal(k2, (3, 7, 160), dtype=jnp.float32)
    y2 = jax.block_until_ready(l2_normalize_last_dim(x2))
    y2_ref = x2 / (jnp.linalg.norm(x2, axis=-1, keepdims=True) + _EPS)
    assert y2.shape == x2.shape and y2.dtype == x2.dtype
    assert jnp.allclose(y2, y2_ref, atol=1e-5, rtol=1e-5), "general path mismatch"

    print("KERNEL_OK")
</pallas_src>

<mosaic_0001>
module attributes {stable_mosaic.version = 11 : i64} {
  func.func @_l2norm_packed_kernel(%arg0: i32, %arg1: memref<16x128xf32, #tpu.memory_space<vmem>>, %arg2: memref<16x128xf32, #tpu.memory_space<vmem>>) attributes {dimension_semantics = [#tpu.dimension_semantics<parallel>], iteration_bounds = array<i64: 1>, scalar_prefetch = 0 : i64, scratch_operands = 0 : i64, tpu.core_type = #tpu.core_type<tc>, window_params = [{transform_indices = @transform_0, window_bounds = array<i64: 16, 128>}, {transform_indices = @transform_1, window_bounds = array<i64: 16, 128>}]} {
    %c0 = arith.constant 0 : index
    %c0_0 = arith.constant 0 : index
    %0 = vector.load %arg1[%c0, %c0_0] : memref<16x128xf32, #tpu.memory_space<vmem>>, vector<16x128xf32>
    %1 = tpu.iota {dimensions = array<i32: 0>} : vector<128x128xi32>
    %2 = arith.sitofp %1 : vector<128x128xi32> to vector<128x128xf32>
    %3 = tpu.iota {dimensions = array<i32: 1>} : vector<128x128xi32>
    %4 = arith.sitofp %3 : vector<128x128xi32> to vector<128x128xf32>
    %cst = arith.constant 5.000000e-01 : f32
    %5 = vector.broadcast %cst : f32 to vector<128x128xf32>
    %6 = arith.addf %2, %5 : vector<128x128xf32>
    %cst_1 = arith.constant 6.250000e-02 : f32
    %7 = vector.broadcast %cst_1 : f32 to vector<128x128xf32>
    %8 = arith.mulf %6, %7 : vector<128x128xf32>
    %9 = math.floor %8 : vector<128x128xf32>
    %cst_2 = arith.constant 5.000000e-01 : f32
    %10 = vector.broadcast %cst_2 : f32 to vector<128x128xf32>
    %11 = arith.addf %4, %10 : vector<128x128xf32>
    %cst_3 = arith.constant 6.250000e-02 : f32
    %12 = vector.broadcast %cst_3 : f32 to vector<128x128xf32>
    %13 = arith.mulf %11, %12 : vector<128x128xf32>
    %14 = math.floor %13 : vector<128x128xf32>
    %15 = arith.cmpf oeq, %9, %14 : vector<128x128xf32>
    %16 = arith.extui %15 : vector<128x128xi1> to vector<128x128xi32>
    %17 = arith.sitofp %16 : vector<128x128xi32> to vector<128x128xf32>
    %18 = arith.mulf %0, %0 : vector<16x128xf32>
    %cst_4 = arith.constant dense<0.000000e+00> : vector<16x128xf32>
    %19 = tpu.matmul %18, %17, %cst_4 {dimension_numbers = #tpu.dot_dimension_numbers<[1], [0], [0], [1], [0, 0, 1, 1], [], []>, precision = #tpu.contract_precision<fp32>} : vector<16x128xf32>, vector<128x128xf32>, vector<16x128xf32> -> vector<16x128xf32>
    %20 = math.sqrt %19 : vector<16x128xf32>
    %cst_5 = arith.constant 9.99999996E-13 : f32
    %21 = vector.broadcast %cst_5 : f32 to vector<16x128xf32>
    %22 = arith.addf %20, %21 : vector<16x128xf32>
    %23 = tpu.reciprocal %22 : vector<16x128xf32> -> vector<16x128xf32>
    %24 = arith.mulf %0, %23 : vector<16x128xf32>
    %c0_6 = arith.constant 0 : index
    %c0_7 = arith.constant 0 : index
    %25 = vector.load %arg2[%c0_6, %c0_7] : memref<16x128xf32, #tpu.memory_space<vmem>>, vector<16x128xf32>
    tpu.vector_store %arg2[%c0_6, %c0_7], %24 {strides = array<i32>} : memref<16x128xf32, #tpu.memory_space<vmem>>, vector<16x128xf32>,
    return
  }
  func.func @transform_0(%arg0: i32) -> (i32, i32) {
    %c0_i32 = arith.constant 0 : i32
    %c0_i32_0 = arith.constant 0 : i32
    return %arg0, %c0_i32 : i32, i32
  }
  func.func @transform_1(%arg0: i32) -> (i32, i32) {
    %c0_i32 = arith.constant 0 : i32
    %c0_i32_0 = arith.constant 0 : i32
    return %arg0, %c0_i32 : i32, i32
  }
}

</mosaic_0001>

<bundles_post_ra>
// kernel: l2_normalize_last_dim.1
= control target key start
LH: loop header
LB: loop body
LE: loop exit
PB: predicated region body
PF: predicated region fallthrough
CT: control target
= control target key end

     0   :  { %v10_v0 = vlaneseq  ;;  %v1451_v46 = vmov 0.0   ;;  %v1452_v50 = vmov 1.0|1.0   ;;  %s1943_s0 = inlined_call_operand.vmem [shape: f32[16,128], index: 0, kind: input, shape index: {}]   ;;  %s1944_s1 = inlined_call_operand.vmem [shape: f32[16,128], index: 1, kind: output, shape index: {}]  }
   0x1   :  { %v1489_v44 = vld [vmem:[%s1943_s0] sm:$0xff]  ;;  %v1494_v45 = vld [vmem:[%s1943_s0 + $0x8] sm:$0xff] }
   0x2   :  { %v1463_v1 = vshrl.u32 %v10_v0, 7  ;;  %v44_v2 = vand.u32 127, %v10_v0  ;;  %v1540_v55 = vmul.f32 %v1489_v44, %v1489_v44  ;;  %v1544_v56 = vmul.f32 %v1494_v45, %v1494_v45 }
   0x4   :  { %v12_v3 = vadd.s32 8, %v1463_v1  ;;  %v27_v4 = vcvt.s32.f32 %v1463_v1  ;;  %v45_v5 = vcvt.s32.f32 %v44_v2  ;;  %v13_v6 = vadd.s32 16, %v1463_v1 }
   0x5   :  { %v14_v7 = vadd.s32 24, %v1463_v1  ;;  %v15_v8 = vadd.s32 32, %v1463_v1  ;;  %v16_v9 = vadd.s32 40, %v1463_v1  ;;  %v17_v10 = vadd.s32 48, %v1463_v1 }
   0x6   :  { %v28_v11 = vcvt.s32.f32 %v12_v3  ;;  %v46_v12 = vadd.f32 0.5, %v27_v4  ;;  %v94_v13 = vadd.f32 0.5, %v45_v5  ;;  %v29_v14 = vcvt.s32.f32 %v13_v6 }
   0x7   :  { %v30_v15 = vcvt.s32.f32 %v14_v7  ;;  %v31_v16 = vcvt.s32.f32 %v15_v8  ;;  %v32_v17 = vcvt.s32.f32 %v16_v9  ;;  %v18_v18 = vadd.s32 56, %v1463_v1 }
   0x8   :  { %v47_v19 = vadd.f32 0.5, %v28_v11  ;;  %v62_v20 = vmul.f32 0.0625, %v46_v12  ;;  %v95_v21 = vmul.f32 0.0625, %v94_v13  ;;  %v48_v22 = vadd.f32 0.5, %v29_v14 }
   0x9   :  { %v49_v23 = vadd.f32 0.5, %v30_v15  ;;  %v50_v24 = vadd.f32 0.5, %v31_v16  ;;  %v51_v25 = vadd.f32 0.5, %v32_v17  ;;  %v33_v26 = vcvt.s32.f32 %v17_v10 }
   0xa   :  { %v63_v27 = vmul.f32 0.0625, %v47_v19  ;;  %v78_v28 = vfloor.f32 %v62_v20  ;;  %v1473_v29 = vfloor.f32 %v95_v21  ;;  %v64_v30 = vmul.f32 0.0625, %v48_v22 }
   0xb   :  { %v65_v31 = vmul.f32 0.0625, %v49_v23  ;;  %v66_v32 = vmul.f32 0.0625, %v50_v24  ;;  %v67_v33 = vmul.f32 0.0625, %v51_v25  ;;  %v34_v34 = vcvt.s32.f32 %v18_v18 }
   0xc   :  { %v79_v35 = vfloor.f32 %v63_v27  ;;  %vm97_vm0 = vcmp.eq.f32.partialorder %v78_v28, %v1473_v29  ;;  %v80_v36 = vfloor.f32 %v64_v30  ;;  %v52_v40 = vadd.f32 0.5, %v33_v26 }
   0xd   :  { %v81_v37 = vfloor.f32 %v65_v31  ;;  %v82_v38 = vfloor.f32 %v66_v32  ;;  %v83_v39 = vfloor.f32 %v67_v33  ;;  %v53_v43 = vadd.f32 0.5, %v34_v34 }
   0xe   :  { %vm1477_vm1 = vcmp.eq.f32.partialorder %v79_v35, %v1473_v29  ;;  %vm1482_vm2 = vcmp.eq.f32.partialorder %v80_v36, %v1473_v29  ;;  %v857_v47 = vsel %vm97_vm0, 1.0, %v1451_v46  ;;  %v68_v54 = vmul.f32 0.0625, %v52_v40 }
   0xf   :  { %vm1499_vm3 = vmpackc.low %vm1477_vm1, %vm97_vm0  ;;  %vm1504_vm4 = vcmp.eq.f32.partialorder %v81_v37, %v1473_v29  ;;  %vm1523_vm6 = vcmp.eq.f32.partialorder %v82_v38, %v1473_v29  ;;  %vm1528_vm7 = vcmp.eq.f32.partialorder %v83_v39, %v1473_v29  ;;  %v858_v57 = vsel %vm1477_vm1, 1.0, %v1451_v46 }
  0x10   :  { %1240 = vmatprep.subr.msk.bf16.mxu1 %vm1499_vm3, %v1452_v50  ;;  %1336 = vmatprep.subr.msk.bf16.mxu0 %vm1499_vm3, %v1452_v50  ;;  %vm1518_vm5 = vmpackc.low %vm1504_vm4, %vm1482_vm2  ;;  %v1549_v58 = vsub.f32 %v857_v47, %v857_v47  ;;  %v69_v59 = vmul.f32 0.0625, %v53_v43  ;;  %v19_v60 = vadd.s32 64, %v1463_v1  ;;  %v84_v62 = vfloor.f32 %v68_v54 }
  0x11   :  { %1242 = vmatpush3.bf16.msk.msra.mxu1 %vm1499_vm3, %v1452_v50  ;;  %1338 = vmatpush3.bf16.msk.msra.mxu0 %vm1499_vm3, %v1452_v50  ;;  %vm1562_vm8 = vmpackc.low %vm1528_vm7, %vm1523_vm6  ;;  %v20_v63 = vadd.s32 72, %v1463_v1  ;;  %v21_v0 = vadd.s32 80, %v1463_v1  ;;  %v22_v2 = vadd.s32 88, %v1463_v1  ;;  %v23_v5 = vadd.s32 96, %v1463_v1 }
  0x12   :  { %1244 = vmatprep.subr.msk.bf16.mxu1 %vm1518_vm5, %v1452_v50  ;;  %1340 = vmatprep.subr.msk.bf16.mxu0 %vm1518_vm5, %v1452_v50  ;;  %v85_v3 = vfloor.f32 %v69_v59  ;;  %v35_v4 = vcvt.s32.f32 %v19_v60  ;;  %v24_v6 = vadd.s32 104, %v1463_v1  ;;  %vm1578_vm9 = vcmp.eq.f32.partialorder %v84_v62, %v1473_v29 }
  0x13   :  { %v36_v8 = vcvt.s32.f32 %v20_v63  ;;  %v37_v9 = vcvt.s32.f32 %v21_v0  ;;  %v38_v10 = vcvt.s32.f32 %v22_v2  ;;  %v859_v11 = vsel %vm1482_vm2, 1.0, %v1451_v46 }
  0x14   :  { %vm1592_vm10 = vcmp.eq.f32.partialorder %v85_v3, %v1473_v29  ;;  %v54_v13 = vadd.f32 0.5, %v35_v4  ;;  %v39_v14 = vcvt.s32.f32 %v23_v5  ;;  %v860_v15 = vsel %vm1504_vm4, 1.0, %v1451_v46 }
  0x15   :  { %1246 = vmatpush3.bf16.msk.msra.mxu1 %vm1518_vm5, %v1452_v50  ;;  %1342 = vmatpush3.bf16.msk.msra.mxu0 %vm1518_vm5, %v1452_v50  ;;  %v861_v16 = vsel %vm1523_vm6, 1.0, %v1451_v46  ;;  %vm1606_vm11 = vmpackc.low %vm1592_vm10, %vm1578_vm9  ;;  %v55_v18 = vadd.f32 0.5, %v36_v8  ;;  %v56_v19 = vadd.f32 0.5, %v37_v9  ;;  %v862_v20 = vsel %vm1528_vm7, 1.0, %v1451_v46 }
  0x16   :  { %1248 = vmatprep.subr.msk.bf16.mxu1 %vm1562_vm8, %v1452_v50  ;;  %1344 = vmatprep.subr.msk.bf16.mxu0 %vm1562_vm8, %v1452_v50  ;;  %v70_v21 = vmul.f32 0.0625, %v54_v13  ;;  %v57_v22 = vadd.f32 0.5, %v38_v10  ;;  %v40_v23 = vcvt.s32.f32 %v24_v6  ;;  %v58_v26 = vadd.f32 0.5, %v39_v14 }
  0x17   :  { %v71_v24 = vmul.f32 0.0625, %v55_v18  ;;  %v72_v25 = vmul.f32 0.0625, %v56_v19  ;;  %v25_v27 = vadd.s32 112, %v1463_v1  ;;  %v26_v32 = vadd.s32 120, %v1463_v1 }
  0x18   :  { %v86_v28 = vfloor.f32 %v70_v21  ;;  %v73_v30 = vmul.f32 0.0625, %v57_v22  ;;  %v59_v31 = vadd.f32 0.5, %v40_v23  ;;  %v74_v35 = vmul.f32 0.0625, %v58_v26 }
  0x19   :  { %1250 = vmatpush3.bf16.msk.msra.mxu1 %vm1562_vm8, %v1452_v50  ;;  %1346 = vmatpush3.bf16.msk.msra.mxu0 %vm1562_vm8, %v1452_v50  ;;  %v87_v33 = vfloor.f32 %v71_v24  ;;  %v88_v34 = vfloor.f32 %v72_v25  ;;  %v41_v36 = vcvt.s32.f32 %v25_v27  ;;  %v42_v40 = vcvt.s32.f32 %v26_v32 }
  0x1a   :  { %1252 = vmatprep.subr.msk.bf16.mxu1 %vm1606_vm11, %v1452_v50  ;;  %1348 = vmatprep.subr.msk.bf16.mxu0 %vm1606_vm11, %v1452_v50  ;;  %vm1628_vm12 = vcmp.eq.f32.partialorder %v86_v28, %v1473_v29  ;;  %v89_v38 = vfloor.f32 %v73_v30  ;;  %v75_v39 = vmul.f32 0.0625, %v59_v31  ;;  %v863_v41 = vsel %vm1578_vm9, 1.0, %v1451_v46 }
  0x1b   :  { %vm1642_vm13 = vcmp.eq.f32.partialorder %v87_v33, %v1473_v29  ;;  %vm1647_vm14 = vcmp.eq.f32.partialorder %v88_v34, %v1473_v29  ;;  %v90_v43 = vfloor.f32 %v74_v35  ;;  %v1651_v47 = vsub.f32 %v858_v57, %v858_v57 }
  0x1c   :  { %v1653_v49 = vsub.f32 %v859_v11, %v859_v11  ;;  %v864_v52 = vsel %vm1592_vm10, 1.0, %v1451_v46  ;;  %vm1662_vm15 = vmpackc.low %vm1642_vm13, %vm1628_vm12  ;;  %vm1667_vm0 = vcmp.eq.f32.partialorder %v89_v38, %v1473_v29  ;;  %v1671_v57 = vsub.f32 %v860_v15, %v860_v15 }
  0x1d   :  { %1254 = vmatpush3.bf16.msk.msra.mxu1 %vm1606_vm11, %v1452_v50  ;;  %1350 = vmatpush3.bf16.msk.msra.mxu0 %vm1606_vm11, %v1452_v50  ;;  %v1673_v59 = vsub.f32 %v861_v16, %v861_v16  ;;  %v1675_v60 = vsub.f32 %v862_v20, %v862_v20  ;;  %vm1687_vm1 = vmpackc.low %vm1667_vm0, %vm1647_vm14  ;;  %v91_v63 = vfloor.f32 %v75_v39  ;;  %v1691_v0 = vsub.f32 %v863_v41, %v863_v41 }
  0x1e   :  { %1256 = vmatprep.subr.msk.bf16.mxu1 %vm1662_vm15, %v1452_v50  ;;  %1352 = vmatprep.subr.msk.bf16.mxu0 %vm1662_vm15, %v1452_v50  ;;  %vm1694_vm2 = vcmp.eq.f32.partialorder %v90_v43, %v1473_v29  ;;  %v60_v3 = vadd.f32 0.5, %v41_v36  ;;  %v61_v4 = vadd.f32 0.5, %v42_v40  ;;  %v1698_v5 = vsub.f32 %v864_v52, %v864_v52 }
  0x1f   :  { %vm1707_vm4 = vcmp.eq.f32.partialorder %v91_v63, %v1473_v29  ;;  %v1712_v7 = vand.u32 4294901760, %v1540_v55  ;;  %v251_v8 = vand.u32 4294901760, %v1549_v58  ;;  %v865_v9 = vsel %vm1628_vm12, 1.0, %v1451_v46 }
  0x20   :  { %v866_v10 = vsel %vm1642_vm13, 1.0, %v1451_v46  ;;  %v76_v11 = vmul.f32 0.0625, %v60_v3  ;;  %v77_v12 = vmul.f32 0.0625, %v61_v4  ;;  %v867_v13 = vsel %vm1647_vm14, 1.0, %v1451_v46  ;;  %vm1734_vm6 = vmpackc.low %vm1707_vm4, %vm1694_vm2 }
  0x21   :  { %1258 = vmatpush3.bf16.msk.msra.mxu1 %vm1662_vm15, %v1452_v50  ;;  %1354 = vmatpush3.bf16.msk.msra.mxu0 %vm1662_vm15, %v1452_v50  ;;  %v1740_v15 = vsub.f32 %v1540_v55, %v1712_v7  ;;  %v252_v16 = vsub.f32 %v1549_v58, %v251_v8  ;;  %v258_v18 = vand.u32 4294901760, %v1651_v47  ;;  %v1745_v21 = vand.u32 4294901760, %v1544_v56 }
  0x22   :  { %1260 = vmatprep.subr.msk.bf16.mxu1 %vm1687_vm1, %v1452_v50  ;;  %1356 = vmatprep.subr.msk.bf16.mxu0 %vm1687_vm1, %v1452_v50  ;;  %v92_v19 = vfloor.f32 %v76_v11  ;;  %v93_v20 = vfloor.f32 %v77_v12  ;;  %v265_v22 = vand.u32 4294901760, %v1653_v49  ;;  %v868_v23 = vsel %vm1667_vm0, 1.0, %v1451_v46 }
  0x23   :  { %v230_v55 = vand.u32 4294901760, %v1740_v15  ;;  %v253_v24 = vand.u32 4294901760, %v252_v16  ;;  %v259_v25 = vsub.f32 %v1651_v47, %v258_v18  ;;  %v1777_v28 = vsub.f32 %v1544_v56, %v1745_v21 }
  0x24   :  { %vm1766_vm7 = vcmp.eq.f32.partialorder %v92_v19, %v1473_v29  ;;  %vm1771_vm9 = vcmp.eq.f32.partialorder %v93_v20, %v1473_v29  ;;  %v272_v30 = vand.u32 4294901760, %v1671_v57  ;;  %v1780_v31 = vsub.f32 %v865_v9, %v865_v9 }
  0x25   :  { %1262 = vmatpush3.bf16.msk.msra.mxu1 %vm1687_vm1, %v1452_v50  ;;  %1358 = vmatpush3.bf16.msk.msra.mxu0 %vm1687_vm1, %v1452_v50  ;;  %v1782_v32 = vsub.f32 %v866_v10, %v866_v10  ;;  %vm1788_vm10 = vmpackc.low %vm1771_vm9, %vm1766_vm7  ;;  %v231_v29 = vsub.f32 %v1740_v15, %v230_v55  ;;  %v260_v34 = vand.u32 4294901760, %v259_v25  ;;  %v1793_v56 = vsub.f32 %v867_v13, %v867_v13 }
  0x26   :  { %1264 = vmatprep.subr.msk.bf16.mxu1 %vm1734_vm6, %v1452_v50  ;;  %1360 = vmatprep.subr.msk.bf16.mxu0 %vm1734_vm6, %v1452_v50  ;;  %v1795_v35 = vsub.f32 %v868_v23, %v868_v23  ;;  %v240_v36 = vand.u32 4294901760, %v1777_v28  ;;  %v266_v37 = vsub.f32 %v1653_v49, %v265_v22  ;;  %v1367_v40 = vpack.c.bf16 %v258_v18, %v251_v8 }
  0x27   :  { %1166 = vmatprep.mubr.f32.mxu0 %v230_v55  ;;  %v232_v38 = vand.u32 4294901760, %v231_v29  ;;  %v1271_v39 = vpack.c.bf16 %v260_v34, %v253_v24  ;;  %v273_v41 = vsub.f32 %v1671_v57, %v272_v30  ;;  %v279_v43 = vand.u32 4294901760, %v1673_v59 }
  0x28   :  { %v241_v1 = vsub.f32 %v1777_v28, %v240_v36  ;;  %v267_v42 = vand.u32 4294901760, %v266_v37  ;;  %v286_v52 = vand.u32 4294901760, %v1675_v60  ;;  %v869_v54 = vsel %vm1694_vm2, 1.0, %v1451_v46 }
  0x29   :  { %1266 = vmatpush3.bf16.msk.msra.mxu1 %vm1734_vm6, %v1452_v50  ;;  %1362 = vmatpush3.bf16.msk.msra.mxu0 %vm1734_vm6, %v1452_v50  ;;  %v274_v63 = vand.u32 4294901760, %v273_v41  ;;  %v293_v3 = vand.u32 4294901760, %v1691_v0  ;;  %v300_v4 = vand.u32 4294901760, %v1698_v5  ;;  %v870_v8 = vsel %vm1707_vm4, 1.0, %v1451_v46 }
  0x2a   :  { %1268 = vmatprep.subr.msk.bf16.mxu1 %vm1788_vm10, %v1452_v50  ;;  %1364 = vmatprep.subr.msk.bf16.mxu0 %vm1788_vm10, %v1452_v50  ;;  %v242_v9 = vand.u32 4294901760, %v241_v1  ;;  %v280_v10 = vsub.f32 %v1673_v59, %v279_v43  ;;  %v287_v11 = vsub.f32 %v1675_v60, %v286_v52  ;;  %v1371_v2 = vpack.c.bf16 %v272_v30, %v265_v22 }
  0x2b   :  { %1061 = vmatprep.mubr.f32.mxu1 %v232_v38  ;;  %v294_v12 = vsub.f32 %v1691_v0, %v293_v3  ;;  %v307_v13 = vand.u32 4294901760, %v1780_v31  ;;  %v314_v6 = vand.u32 4294901760, %v1782_v32  ;;  %v1275_v16 = vpack.c.bf16 %v274_v63, %v267_v42 }
  0x2c   :  { %v281_v18 = vand.u32 4294901760, %v280_v10  ;;  %v288_v19 = vand.u32 4294901760, %v287_v11  ;;  %v301_v20 = vsub.f32 %v1698_v5, %v300_v4  ;;  %v1835_v23 = vsub.f32 %v869_v54, %v869_v54 }
  0x2d   :  { %1270 = vmatpush3.bf16.msk.msra.mxu1 %vm1788_vm10, %v1452_v50  ;;  %1366 = vmatpush3.bf16.msk.msra.mxu0 %vm1788_vm10, %v1452_v50  ;;  %v1837_v55 = vsub.f32 %v870_v8, %v870_v8  ;;  %v871_v22 = vsel %vm1766_vm7, 1.0, %v1451_v46  ;;  %v872_v24 = vsel %vm1771_vm9, 1.0, %v1451_v46  ;;  %v1375_v25 = vpack.c.bf16 %v286_v52, %v279_v43 }
  0x2e   :  { %1272 = vmatprep.subr.bf16.mxu1 %v1271_v39  ;;  %1368 = vmatprep.subr.bf16.mxu0 %v1367_v40  ;;  %v295_v30 = vand.u32 4294901760, %v294_v12  ;;  %v308_v29 = vsub.f32 %v1780_v31, %v307_v13  ;;  %v315_v34 = vsub.f32 %v1782_v32, %v314_v6  ;;  %v1279_v37 = vpack.c.bf16 %v288_v19, %v281_v18 }
  0x2f   :  { %v302_v38 = vand.u32 4294901760, %v301_v20  ;;  %v321_v26 = vand.u32 4294901760, %v1793_v56  ;;  %v328_v41 = vand.u32 4294901760, %v1795_v35  ;;  %v1850_v46 = vsub.f32 %v871_v22, %v871_v22 }
  0x30   :  { %1062 = vmatmul.mubr.f32.vlgmr.msra.gmra.mrb[0].mxu1 %v242_v9  ;;  %1167 = vmatmul.mubr.f32.vlgmr.msra.gmra.mrb[0].mxu0 %v240_v36  ;;  %v1852_v27 = vsub.f32 %v872_v24, %v872_v24  ;;  %v1379_v36 = vpack.c.bf16 %v300_v4, %v293_v3  ;;  %v335_v1 = vand.u32 4294901760, %v1835_v23  ;;  %v342_v54 = vand.u32 4294901760, %v1837_v55 }
  0x31   :  { %1274 = vmatpush3.bf16.msra.mxu1 %v1271_v39  ;;  %1370 = vmatpush3.bf16.msra.mxu0 %v1367_v40  ;;  %v309_v39 = vand.u32 4294901760, %v308_v29  ;;  %v316_v40 = vand.u32 4294901760, %v315_v34  ;;  %v1283_v42 = vpack.c.bf16 %v302_v38, %v295_v30  ;;  %v322_v43 = vsub.f32 %v1793_v56, %v321_v26 }
  0x32   :  { %1276 = vmatprep.subr.bf16.mxu1 %v1275_v16  ;;  %1372 = vmatprep.subr.bf16.mxu0 %v1371_v2  ;;  %v329_v52 = vsub.f32 %v1795_v35, %v328_v41  ;;  %v1383_v8 = vpack.c.bf16 %v314_v6, %v307_v13  ;;  %v336_v9 = vsub.f32 %v1835_v23, %v335_v1  ;;  %v349_v3 = vand.u32 4294901760, %v1850_v46 }
  0x33   :  { %1096 = vmatprep.mubr.f32.mxu1 %v1712_v7  ;;  %1201 = vmatprep.mubr.f32.mxu0 %v1712_v7  ;;  %v1287_v63 = vpack.c.bf16 %v316_v40, %v309_v39  ;;  %v323_v4 = vand.u32 4294901760, %v322_v43  ;;  %v343_v11 = vsub.f32 %v1837_v55, %v342_v54  ;;  %v1387_v12 = vpack.c.bf16 %v328_v41, %v321_v26 }
  0x34   :  { %v330_v10 = vand.u32 4294901760, %v329_v52  ;;  %v337_v6 = vand.u32 4294901760, %v336_v9  ;;  %v1391_v22 = vpack.c.bf16 %v342_v54, %v335_v1  ;;  %v1303_v34 = vpack.c.bf16 %v1651_v47, %v1549_v58 }
  0x35   :  { %1278 = vmatpush3.bf16.msra.mxu1 %v1275_v16  ;;  %1374 = vmatpush3.bf16.msra.mxu0 %v1371_v2  ;;  %v356_v2 = vand.u32 4294901760, %v1852_v27  ;;  %v350_v16 = vsub.f32 %v1850_v46, %v349_v3  ;;  %v344_v18 = vand.u32 4294901760, %v343_v11  ;;  %v1311_v58 = vpack.c.bf16 %v1675_v60, %v1673_v59 }
  0x36   :  { %1280 = vmatprep.subr.bf16.mxu1 %v1279_v37  ;;  %1376 = vmatprep.subr.bf16.mxu0 %v1375_v25  ;;  %v1291_v13 = vpack.c.bf16 %v330_v10, %v323_v4  ;;  %v1315_v48 = vpack.c.bf16 %v1698_v5, %v1691_v0  ;;  %v1319_v51 = vpack.c.bf16 %v1782_v32, %v1780_v31 }
  0x37   :  { %v357_v19 = vsub.f32 %v1852_v27, %v356_v2  ;;  %v1295_v20 = vpack.c.bf16 %v344_v18, %v337_v6  ;;  %v351_v24 = vand.u32 4294901760, %v350_v16  ;;  %v1395_v29 = vpack.c.bf16 %v356_v2, %v349_v3 }
  0x38   :  { %v1323_v61 = vpack.c.bf16 %v1795_v35, %v1793_v56  ;;  %v1327_v17 = vpack.c.bf16 %v1837_v55, %v1835_v23  ;;  %v1331_v47 = vpack.c.bf16 %v1852_v27, %v1850_v46 }
  0x39   :  { %1282 = vmatpush3.bf16.msra.mxu1 %v1279_v37  ;;  %1378 = vmatpush3.bf16.msra.mxu0 %v1375_v25  ;;  %v358_v25 = vand.u32 4294901760, %v357_v19  ;;  %v1307_v37 = vpack.c.bf16 %v1671_v57, %v1653_v49 }
  0x3a   :  { %1284 = vmatprep.subr.bf16.mxu1 %v1283_v42  ;;  %1380 = vmatprep.subr.bf16.mxu0 %v1379_v36 }
  0x3b   :  { %v1299_v30 = vpack.c.bf16 %v358_v25, %v351_v24 }
  0x3d   :  { %1286 = vmatpush3.bf16.msra.mxu1 %v1283_v42  ;;  %1382 = vmatpush3.bf16.msra.mxu0 %v1379_v36 }
  0x3e   :  { %1288 = vmatprep.subr.bf16.mxu1 %v1287_v63  ;;  %1384 = vmatprep.subr.bf16.mxu0 %v1383_v8 }
  0x41   :  { %1290 = vmatpush3.bf16.msra.mxu1 %v1287_v63  ;;  %1386 = vmatpush3.bf16.msra.mxu0 %v1383_v8 }
  0x42   :  { %1292 = vmatprep.subr.bf16.mxu1 %v1291_v13  ;;  %1388 = vmatprep.subr.bf16.mxu0 %v1387_v12 }
  0x45   :  { %1294 = vmatpush3.bf16.msra.mxu1 %v1291_v13  ;;  %1390 = vmatpush3.bf16.msra.mxu0 %v1387_v12 }
  0x46   :  { %1296 = vmatprep.subr.bf16.mxu1 %v1295_v20  ;;  %1392 = vmatprep.subr.bf16.mxu0 %v1391_v22 }
  0x49   :  { %1298 = vmatpush3.bf16.msra.mxu1 %v1295_v20  ;;  %1394 = vmatpush3.bf16.msra.mxu0 %v1391_v22 }
  0x4a   :  { %1300 = vmatprep.subr.bf16.mxu1 %v1299_v30  ;;  %1396 = vmatprep.subr.bf16.mxu0 %v1395_v29 }
  0x4d   :  { %1302 = vmatpush3.bf16.msra.mxu1 %v1299_v30  ;;  %1398 = vmatpush3.bf16.msra.mxu0 %v1395_v29 }
  0x4e   :  { %1304 = vmatprep.subr.bf16.mxu1 %v1303_v34  ;;  %1400 = vmatprep.subr.msk.bf16.mxu0 %vm1499_vm3, %v1452_v50 }
  0x50   :  { %1097 = vmatmul.mubr.f32.vlgmr.msra.gmra.mrb[0].mxu1 %v1745_v21  ;;  %1202 = vmatmul.mubr.f32.vlgmr.msra.gmra.mrb[0].mxu0 %v1745_v21 }
  0x51   :  { %1306 = vmatpush3.bf16.msra.mxu1 %v1303_v34  ;;  %1402 = vmatpush3.bf16.msk.msra.mxu0 %vm1499_vm3, %v1452_v50 }
  0x52   :  { %1308 = vmatprep.subr.bf16.mxu1 %v1307_v37  ;;  %1404 = vmatprep.subr.msk.bf16.mxu0 %vm1518_vm5, %v1452_v50 }
  0x53   :  { %1131 = vmatprep.mubr.f32.mxu1 %v1740_v15  ;;  %1236 = vmatprep.mubr.f32.mxu0 %v1712_v7 }
  0x55   :  { %1310 = vmatpush3.bf16.msra.mxu1 %v1307_v37  ;;  %1406 = vmatpush3.bf16.msk.msra.mxu0 %vm1518_vm5, %v1452_v50 }
  0x56   :  { %1312 = vmatprep.subr.bf16.mxu1 %v1311_v58  ;;  %1408 = vmatprep.subr.msk.bf16.mxu0 %vm1562_vm8, %v1452_v50 }
  0x59   :  { %1314 = vmatpush3.bf16.msra.mxu1 %v1311_v58  ;;  %1410 = vmatpush3.bf16.msk.msra.mxu0 %vm1562_vm8, %v1452_v50 }
  0x5a   :  { %1316 = vmatprep.subr.bf16.mxu1 %v1315_v48  ;;  %1412 = vmatprep.subr.msk.bf16.mxu0 %vm1606_vm11, %v1452_v50 }
  0x5d   :  { %1318 = vmatpush3.bf16.msra.mxu1 %v1315_v48  ;;  %1414 = vmatpush3.bf16.msk.msra.mxu0 %vm1606_vm11, %v1452_v50 }
  0x5e   :  { %1320 = vmatprep.subr.bf16.mxu1 %v1319_v51  ;;  %1416 = vmatprep.subr.msk.bf16.mxu0 %vm1662_vm15, %v1452_v50 }
  0x61   :  { %1322 = vmatpush3.bf16.msra.mxu1 %v1319_v51  ;;  %1418 = vmatpush3.bf16.msk.msra.mxu0 %vm1662_vm15, %v1452_v50 }
  0x62   :  { %1324 = vmatprep.subr.bf16.mxu1 %v1323_v61  ;;  %1420 = vmatprep.subr.msk.bf16.mxu0 %vm1687_vm1, %v1452_v50 }
  0x65   :  { %1326 = vmatpush3.bf16.msra.mxu1 %v1323_v61  ;;  %1422 = vmatpush3.bf16.msk.msra.mxu0 %vm1687_vm1, %v1452_v50 }
  0x66   :  { %1328 = vmatprep.subr.bf16.mxu1 %v1327_v17  ;;  %1424 = vmatprep.subr.msk.bf16.mxu0 %vm1734_vm6, %v1452_v50 }
  0x69   :  { %1330 = vmatpush3.bf16.msra.mxu1 %v1327_v17  ;;  %1426 = vmatpush3.bf16.msk.msra.mxu0 %vm1734_vm6, %v1452_v50 }
  0x6a   :  { %1332 = vmatprep.subr.bf16.mxu1 %v1331_v47  ;;  %1428 = vmatprep.subr.msk.bf16.mxu0 %vm1788_vm10, %v1452_v50 }
  0x6d   :  { %1334 = vmatpush3.bf16.msra.mxu1 %v1331_v47  ;;  %1430 = vmatpush3.bf16.msk.msra.mxu0 %vm1788_vm10, %v1452_v50 }
  0x70   :  { %1132 = vmatmul.mubr.f32.vlgmr.msra.gmra.mrb[0].mxu1 %v1777_v28  ;;  %1237 = vmatmul.mubr.f32.vlgmr.msra.gmra.mrb[0].mxu0 %v1745_v21 }
 0x143   :  { %v1133_v49 = vpop.f32.mrb[0].mxu1  ;;  %v1238_v53 = vpop.f32.mrb[0].mxu0 }
 0x144   :  { %v1431_v57 = vadd.f32 %v1238_v53, %v1133_v49  ;;  %v505_v59 = vpop.f32.mrb[1].mxu1  ;;  %v821_v60 = vpop.f32.mrb[1].mxu0 }
 0x145   :  { %v1432_v62 = vadd.f32 %v821_v60, %v505_v59 }
 0x146   :  { %1443 = vrsqrt.f32 %v1431_v57  ;;  %vm840_vm3 = vcmp.eq.f32.partialorder %v1431_v57, inf  ;;  %v843_v14 = vand.u32 2147483648, %v1431_v57  ;;  %vm842_vm5 = vcmp.eq.f32.partialorder %v1431_v57, 0.0 }
 0x147   :  { %1445 = vrsqrt.f32 %v1432_v62  ;;  %vm833_vm8 = vcmp.eq.f32.partialorder %v1432_v62, inf  ;;  %v836_v50 = vand.u32 2147483648, %v1432_v62  ;;  %vm835_vm11 = vcmp.eq.f32.partialorder %v1432_v62, 0.0 }
 0x150   :  { %v1444_v0 = vpop.eup %1443 }
 0x151   :  { %v1446_v5 = vpop.eup %1445  ;;  %v839_v7 = vmul.f32 %v1444_v0, %v1431_v57 }
 0x152   :  { %v832_v15 = vmul.f32 %v1446_v5, %v1432_v62 }
 0x153   :  { %v841_v31 = vsel %vm840_vm3, %v1431_v57, %v839_v7 }
 0x154   :  { %v844_v28 = vsel %vm842_vm5, %v843_v14, %v841_v31  ;;  %v834_v21 = vsel %vm833_vm8, %v1432_v62, %v832_v15 }
 0x155   :  { %v846_v32 = vadd.f32 1e-12, %v844_v28  ;;  %v837_v33 = vsel %vm835_vm11, %v836_v50, %v834_v21 }
 0x156   :  { %v845_v56 = vadd.f32 1e-12, %v837_v33 }
 0x157   :  { %1447 = vrcp.f32 %v846_v32 }
 0x158   :  { %1449 = vrcp.f32 %v845_v56 }
 0x161   :  { %v1448_v35 = vpop.eup %1447 }
 0x162   :  { %v1450_v23 = vpop.eup %1449  ;;  %v850_v55 = vmul.f32 %v1448_v35, %v1494_v45 }
 0x163   :  { %v849_v38 = vmul.f32 %v1450_v23, %v1489_v44 }
 0x164   :  { %852 = vst [vmem:[%s1944_s1 + $0x8] sm:$0xff] %v850_v55 }
 0x165   :  { %851 = vst [vmem:[%s1944_s1] sm:$0xff] %v849_v38 }

</bundles_post_ra>
